<compile_context>
chip_gen: v6e
topology: v6e:2x2x1
jax: 0.10.0
libtpu: 0.0.40
codegen_flags: <defaults>
</compile_context>

<pallas_src>
import functools
import math

import jax
import jax.numpy as jnp
from jax.experimental import pallas as pl
from jax.experimental.pallas import tpu as pltpu


# ---------------------------------------------------------------------------
# Kernels
# ---------------------------------------------------------------------------

def _rmsnorm_kernel(x_ref, w_ref, o_ref, *, eps):
    """Plain path: tile is (block_rows, D); reduce over the last axis."""
    x = x_ref[...].astype(jnp.float32)                           # x.float()
    ms = jnp.mean(x * x, axis=-1, keepdims=True)                 # mean(x^2, -1, keepdim)
    normed = (x * jax.lax.rsqrt(ms + eps)).astype(x_ref.dtype)   # .type_as(x)
    # weight (already in out dtype) * normed (x dtype) -> promotes like torch.
    o_ref[...] = (w_ref[...] * normed).astype(o_ref.dtype)


def _rmsnorm_kernel_packed(x_ref, w_ref, m_ref, o_ref, *, eps, inv_d):
    """Lane-dense path for D not a multiple of 128 (e.g. D=32).

    k original rows are folded into the lane axis so tiles are
    (block_rows, k*D) with k*D % 128 == 0 (no masked vld/vst). The per-row
    mean(x^2) is a segmented reduction within lanes, implemented as a small
    matmul against a block-diagonal 0/1 matrix; HIGHEST precision keeps the
    f32 sum accurate. The MXU is idle in this HBM-bound kernel, so this is
    effectively free and removes all masked lane ops.
    """
    x = x_ref[...].astype(jnp.float32)
    seg_sum = jnp.dot(x * x, m_ref[...],
                      precision=jax.lax.Precision.HIGHEST,
                      preferred_element_type=jnp.float32)
    ms = seg_sum * inv_d
    normed = (x * jax.lax.rsqrt(ms + eps)).astype(x_ref.dtype)
    o_ref[...] = (w_ref[...] * normed).astype(o_ref.dtype)


# ---------------------------------------------------------------------------
# Tiling helpers
# ---------------------------------------------------------------------------

def _round_up(n, m):
    return ((n + m - 1) // m) * m


def _vmem_capacity_bytes():
    try:
        return int(pltpu.get_tpu_info().vmem_capacity_bytes)
    except Exception:
        return None  # unknown -> assume the small (64 MiB) part below


def _pick_pack_factor(rows, d):
    """Smallest k with k*d % 128 == 0 that evenly divides `rows`; None -> no repack."""
    if d % 128 == 0:
        return None
    k = 128 // math.gcd(d, 128)
    if k <= 1 or rows % k != 0:
        return None
    if k * d > 512:  # keep the (k*d, k*d) averaging matrix tiny (<= 1 MiB)
        return None
    return k


def _choose_block_rows(rows, d, in_itemsize, out_itemsize, extra_bytes, vmem_capacity):
    """Row-tile size: as large as the VMEM budget allows (multi-MiB tiles, no
    hard row cap), with a split for medium/large inputs so v7x's two
    TensorCores both get work."""
    # Resident bytes per row: double-buffered input + output tiles, plus up to
    # ~3 full-tile f32 temporaries (x.float(), x*x, normed-before-cast).
    per_row = d * (2 * in_itemsize + 2 * out_itemsize + 12)

    # Generation-aware budget: ~20 MiB on 64 MiB parts (v7x), ~44 MiB on
    # 128 MiB parts (v5e/v6e). Unknown -> assume the small part.
    small_part = vmem_capacity is None or vmem_capacity <= 80 * 1024 * 1024
    budget = (20 if small_part else 44) * 1024 * 1024
    budget = max(budget - extra_bytes, 4 * 1024 * 1024)

    # Sublane packing: 8 rows for f32, 16 for bf16/f16, 32 for int8.
    sublane = max(8, (4 // max(in_itemsize, 1)) * 8)

    if rows <= sublane:
        return rows  # single block equal to the full (tiny) array: no masking

    br = max(budget // max(per_row, 1), sublane)

    # Megacore: once there is enough data to amortize the ~0.35 us/step
    # overhead, force >= 4 (or >= 2) grid steps so the "parallel" axis shards
    # across v7x's two TensorCores. Negligible cost on v5e/v6e (1 TC/chip).
    total_in_bytes = rows * d * in_itemsize
    if rows >= 4 * sublane and total_in_bytes >= 4 * 1024 * 1024:
        br = min(br, _round_up(pl.cdiv(rows, 4), sublane))
    elif rows >= 2 * sublane and total_in_bytes >= 1024 * 1024:
        br = min(br, _round_up(pl.cdiv(rows, 2), sublane))

    # Don't tile far past the actual row count (small inputs).
    br = min(br, _round_up(rows, sublane))
    br = max((br // sublane) * sublane, sublane)
    return br


# ---------------------------------------------------------------------------
# Public wrapper
# ---------------------------------------------------------------------------

def rmsnorm(x, weight, eps=1e-6, block_rows=None):
    """x: (..., D); weight: (D,). Returns promote_types(x.dtype, weight.dtype)
    array of x's shape, matching the PyTorch RMSNorm forward."""
    orig_shape = x.shape
    d = orig_shape[-1]
    rows = 1
    for s in orig_shape[:-1]:
        rows *= s

    out_dtype = jnp.promote_types(x.dtype, weight.dtype)
    in_itemsize = jnp.dtype(x.dtype).itemsize
    out_itemsize = jnp.dtype(out_dtype).itemsize
    vmem_capacity = _vmem_capacity_bytes()

    k = _pick_pack_factor(rows, d)

    if k is None:
        # Plain path (covers all D; unmasked when D % 128 == 0).
        d_eff, rows_eff = d, rows
        x2d = x.reshape(rows_eff, d_eff)
        # Hoist the weight cast out of the kernel: pass it once in out dtype.
        w2d = weight.astype(out_dtype).reshape(1, d_eff)
        extra_bytes = d_eff * out_itemsize  # resident weight row
        kernel = functools.partial(_rmsnorm_kernel, eps=eps)
        extra_operands = (w2d,)
        extra_in_specs = [pl.BlockSpec((1, d_eff), lambda i: (0, 0))]
    else:
        # Lane-dense repack: fold k rows into the lane axis (k*d % 128 == 0).
        d_eff, rows_eff = k * d, rows // k
        x2d = x.reshape(rows_eff, d_eff)
        w2d = jnp.tile(weight.astype(out_dtype), k).reshape(1, d_eff)
        seg = jnp.arange(d_eff, dtype=jnp.int32) // d
        m = (seg[:, None] == seg[None, :]).astype(jnp.float32)  # block-diag 0/1
        extra_bytes = d_eff * out_itemsize + d_eff * d_eff * 4
        kernel = functools.partial(_rmsnorm_kernel_packed, eps=eps, inv_d=1.0 / d)
        extra_operands = (w2d, m)
        extra_in_specs = [
            pl.BlockSpec((1, d_eff), lambda i: (0, 0)),
            pl.BlockSpec((d_eff, d_eff), lambda i: (0, 0)),
        ]

    if block_rows is None:
        block_rows = _choose_block_rows(rows_eff, d_eff, in_itemsize,
                                        out_itemsize, extra_bytes, vmem_capacity)

    grid = (pl.cdiv(rows_eff, block_rows),)

    # Scoped VMEM limit: >= 2x the resident estimate, but generation-aware caps
    # (48 MiB on 64 MiB parts to leave Mosaic scratch headroom; 100 MiB on
    # 128 MiB parts).
    resident = (block_rows * d_eff * (2 * in_itemsize + 2 * out_itemsize + 12)
                + extra_bytes)
    small_part = vmem_capacity is None or vmem_capacity <= 80 * 1024 * 1024
    cap = (48 if small_part else 100) * 1024 * 1024
    vmem_limit = int(min(max(2 * resident, 32 * 1024 * 1024), cap))

    cost = pl.CostEstimate(
        flops=3 * rows * d,
        transcendentals=rows,
        bytes_accessed=rows * d * (in_itemsize + out_itemsize) + d * out_itemsize,
    )

    out = pl.pallas_call(
        kernel,
        out_shape=jax.ShapeDtypeStruct((rows_eff, d_eff), out_dtype),
        grid_spec=pltpu.PrefetchScalarGridSpec(
            num_scalar_prefetch=0,
            grid=grid,
            in_specs=[pl.BlockSpec((block_rows, d_eff), lambda i: (i, 0))]
                     + extra_in_specs,
            out_specs=pl.BlockSpec((block_rows, d_eff), lambda i: (i, 0)),
        ),
        compiler_params=pltpu.CompilerParams(
            dimension_semantics=("parallel",),
            vmem_limit_bytes=vmem_limit,
        ),
        cost_estimate=cost,
    )(x2d, *extra_operands)

    return out.reshape(orig_shape)


def rmsnorm_reference(x, weight, eps=1e-6):
    xf = x.astype(jnp.float32)
    normed = xf * jax.lax.rsqrt(jnp.mean(xf * xf, axis=-1, keepdims=True) + eps)
    return weight * normed.astype(x.dtype)


# TODO(synk): optional bf16-output mode (cast weight down instead of promoting
# the output) would cut HBM writeback by ~33% but deviates from strict torch
# dtype promotion, so it is not enabled here.

if __name__ == "__main__":
    # Case 1: hidden=32 (lane-dense repacked path, k=4 -> 128 lanes), weight
    # initialized like nn.Parameter(torch.ones(dim)).
    key = jax.random.PRNGKey(0)
    B, S, D = 2, 8, 32
    x = jax.random.normal(key, (B, S, D), dtype=jnp.float32)
    weight = jnp.ones((D,), dtype=jnp.float32)
    out = jax.block_until_ready(rmsnorm(x, weight, eps=1e-6))
    ref = rmsnorm_reference(x, weight, eps=1e-6)
    assert out.shape == x.shape
    assert out.dtype == jnp.promote_types(x.dtype, weight.dtype)
    # Loose-ish tolerance: the segmented mean goes through MXU pass decomposition.
    assert jnp.allclose(out, ref, atol=1e-3, rtol=1e-3), "case 1 mismatch"

    # Case 2: D % 128 == 0 (plain path), explicit block_rows forcing a 2-step
    # grid with a partial tail block (rows=120, block=64).
    x2 = jax.random.normal(jax.random.PRNGKey(1), (3, 40, 128), dtype=jnp.float32)
    w2 = 0.5 + jax.random.uniform(jax.random.PRNGKey(11), (128,), dtype=jnp.float32)
    out2 = jax.block_until_ready(rmsnorm(x2, w2, eps=1e-6, block_rows=64))
    ref2 = rmsnorm_reference(x2, w2, eps=1e-6)
    assert jnp.allclose(out2, ref2, atol=2e-5, rtol=2e-5), "case 2 mismatch"

    # Case 3: bf16 activations with f32 weight -> torch-style promotion to f32.
    x3 = jax.random.normal(jax.random.PRNGKey(2), (2, 16, 128), dtype=jnp.bfloat16)
    w3 = 0.5 + jax.random.uniform(jax.random.PRNGKey(12), (128,), dtype=jnp.float32)
    out3 = jax.block_until_ready(rmsnorm(x3, w3, eps=1e-6))
    ref3 = rmsnorm_reference(x3, w3, eps=1e-6)
    assert out3.dtype == jnp.float32
    assert jnp.allclose(out3, ref3, atol=2e-2, rtol=2e-2), "case 3 mismatch"

    print("KERNEL_OK")
</pallas_src>

<mosaic_0001>
module attributes {stable_mosaic.version = 11 : i64} {
  func.func @_rmsnorm_kernel_packed(%arg0: i32, %arg1: memref<4x128xf32, #tpu.memory_space<vmem>>, %arg2: memref<1x128xf32, #tpu.memory_space<vmem>>, %arg3: memref<128x128xf32, #tpu.memory_space<vmem>>, %arg4: memref<4x128xf32, #tpu.memory_space<vmem>>) attributes {dimension_semantics = [#tpu.dimension_semantics<parallel>], iteration_bounds = array<i64: 1>, scalar_prefetch = 0 : i64, scratch_operands = 0 : i64, tpu.core_type = #tpu.core_type<tc>, window_params = [{transform_indices = @transform_0, window_bounds = array<i64: 4, 128>}, {pipeline_mode = #tpu.pipeline_mode<synchronous>, transform_indices = @transform_1, window_bounds = array<i64: 1, 128>}, {pipeline_mode = #tpu.pipeline_mode<synchronous>, transform_indices = @transform_2, window_bounds = array<i64: 128, 128>}, {transform_indices = @transform_3, window_bounds = array<i64: 4, 128>}]} {
    %c0 = arith.constant 0 : index
    %c0_0 = arith.constant 0 : index
    %0 = vector.load %arg1[%c0, %c0_0] : memref<4x128xf32, #tpu.memory_space<vmem>>, vector<4x128xf32>
    %1 = arith.mulf %0, %0 : vector<4x128xf32>
    %c0_1 = arith.constant 0 : index
    %c0_2 = arith.constant 0 : index
    %2 = vector.load %arg3[%c0_1, %c0_2] : memref<128x128xf32, #tpu.memory_space<vmem>>, vector<128x128xf32>
    %cst = arith.constant dense<0.000000e+00> : vector<4x128xf32>
    %3 = tpu.matmul %1, %2, %cst {dimension_numbers = #tpu.dot_dimension_numbers<[1], [0], [0], [1], [0, 0, 1, 1], [], []>, precision = #tpu.contract_precision<fp32>} : vector<4x128xf32>, vector<128x128xf32>, vector<4x128xf32> -> vector<4x128xf32>
    %cst_3 = arith.constant 3.125000e-02 : f32
    %4 = vector.broadcast %cst_3 : f32 to vector<4x128xf32>
    %5 = arith.mulf %3, %4 : vector<4x128xf32>
    %cst_4 = arith.constant 9.99999997E-7 : f32
    %6 = vector.broadcast %cst_4 : f32 to vector<4x128xf32>
    %7 = arith.addf %5, %6 : vector<4x128xf32>
    %8 = math.rsqrt %7 : vector<4x128xf32>
    %9 = arith.mulf %0, %8 : vector<4x128xf32>
    %c0_5 = arith.constant 0 : index
    %c0_6 = arith.constant 0 : index
    %10 = vector.load %arg2[%c0_5, %c0_6] : memref<1x128xf32, #tpu.memory_space<vmem>>, vector<1x128xf32>
    %11 = vector.broadcast %10 : vector<1x128xf32> to vector<4x128xf32>
    %12 = arith.mulf %11, %9 : vector<4x128xf32>
    %c0_7 = arith.constant 0 : index
    %c0_8 = arith.constant 0 : index
    %13 = vector.load %arg4[%c0_7, %c0_8] : memref<4x128xf32, #tpu.memory_space<vmem>>, vector<4x128xf32>
    tpu.vector_store %arg4[%c0_7, %c0_8], %12 {strides = array<i32>} : memref<4x128xf32, #tpu.memory_space<vmem>>, vector<4x128xf32>,
    return
  }
  func.func @transform_0(%arg0: i32) -> (i32, i32) {
    %c0_i32 = arith.constant 0 : i32
    %c0_i32_0 = arith.constant 0 : i32
    return %arg0, %c0_i32 : i32, i32
  }
  func.func @transform_1(%arg0: i32) -> (i32, i32) {
    %c0_i32 = arith.constant 0 : i32
    %c0_i32_0 = arith.constant 0 : i32
    %c0_i32_1 = arith.constant 0 : i32
    return %c0_i32, %c0_i32_0 : i32, i32
  }
  func.func @transform_2(%arg0: i32) -> (i32, i32) {
    %c0_i32 = arith.constant 0 : i32
    %c0_i32_0 = arith.constant 0 : i32
    %c0_i32_1 = arith.constant 0 : i32
    return %c0_i32, %c0_i32_0 : i32, i32
  }
  func.func @transform_3(%arg0: i32) -> (i32, i32) {
    %c0_i32 = arith.constant 0 : i32
    %c0_i32_0 = arith.constant 0 : i32
    return %arg0, %c0_i32 : i32, i32
  }
}

</mosaic_0001>

<bundles_post_ra>
// kernel: tpu_custom_call.1
= control target key start
LH: loop header
LB: loop body
LE: loop exit
PB: predicated region body
PF: predicated region fallthrough
CT: control target
= control target key end

     0   :  { %8 = vsyncpa [#allocation3], 0  ;;  %s1524_s0 = inlined_call_operand.hbm [shape: f32[4,128], index: 0, kind: input, shape index: {}]   ;;  %s1525_s1 = inlined_call_operand.vmem [shape: f32[1,128], index: 1, kind: input, shape index: {}]   ;;  %s1526_s2 = inlined_call_operand.hbm [shape: f32[128,128], index: 2, kind: input, shape index: {}]   ;;  %s1527_s3 = inlined_call_operand.hbm [shape: f32[4,128], index: 3, kind: output, shape index: {}]  }
   0x1   :  { %9 = vsyncpa [#allocation6], 0 }
   0x2   :  { %10 = vsyncpa [#allocation4], 0  ;;  %s1117_s12 = smov [#allocation2]   ;;  %s1118_s14 = smov [#allocation5]  }
   0x3   :  { %s17_s13 = sshll.u32 %s1117_s12, 4  ;;  %s28_s15 = sshll.u32 %s1118_s14, 4  ;;  %s18_s13 = int_to_ptr.vmem [resolvable:$true] %s17_s13  ;;  %s29_s15 = int_to_ptr.vmem [resolvable:$true] %s28_s15 }
   0x4   :  { %s1059_s16 = scalar_lea.vmem %s18_s13, 64  ;;  %p1064_p1 = scmp.lt.s32.totalorder %s18_s13, %s18_s13 }
   0x5   :  { %p1060_p0 = scmp.ne.s32.totalorder %s18_s13, %s1059_s16  ;;  %p1065_p2 = scmp.lt.s32.totalorder %s1059_s16, %s1059_s16 }
   0x7   :  { %p1066_p3 = por %p1065_p2, %p1064_p1 }
   0x9   :  { %p1067_p4 = pnand %p1066_p3, %p1060_p0 }
   0xb   :  { %1070 = shalt.err (!%p1067_p4)
}
   0xc   :  { %20 = dma.hbm_to_vmem [thread:$0]  %s1524_s0, 64, %s18_s13, [#allocation3]  }
   0xd   :  { %s1079_s19 = scalar_lea.vmem %s29_s15, 2048  ;;  %p1084_p6 = scmp.lt.s32.totalorder %s29_s15, %s29_s15 }
   0xe   :  { %p1080_p5 = scmp.ne.s32.totalorder %s29_s15, %s1079_s19  ;;  %p1085_p7 = scmp.lt.s32.totalorder %s1079_s19, %s1079_s19 }
  0x10   :  { %p1086_p8 = por %p1085_p7, %p1084_p6 }
  0x12   :  { %p1087_p9 = pnand %p1086_p8, %p1080_p5 }
  0x14   :  { %1090 = shalt.err (!%p1087_p9)
}
  0x15   :  { %s1119_s20 = smov 128   ;;  %s1120_s21 = smov 8  }
  0x16   :  { %34 = dma.hbm_to_vmem [thread:$0]  %s1526_s2, 2048, %s29_s15, [#allocation6], %s1119_s20, %s1119_s20, %s1120_s21  }
  0x17   :  { %1111 = dma.done.wait [#allocation3], 64  }
  0x18   :  { %1112 = vsyncadd [#allocation3], 4294967232 }
  0x19   :  { %1113 = dma.done.wait [#allocation6], 2048  }
  0x1a   :  { %1114 = vsyncadd [#allocation6], 4294965248  ;;  %v1121_v0 = vmov 0.0   ;;  %vm1122_vm0 = vmmov 0   ;;  %v58_v1 = vld [vmem:[#allocation5 + $0x78] sm:$0xff]  ;;  %v57_v2 = vld [vmem:[#allocation5 + $0x70] sm:$0xff] }
  0x1b   :  { %832 = vmatprep.subr.mxu0 %v1121_v0  ;;  %867 = vmatprep.subr.mxu1 %v1121_v0  ;;  %v56_v3 = vld [vmem:[#allocation5 + $0x68] sm:$0xff]  ;;  %v1156_v4 = vand.u32 4294901760, %v58_v1  ;;  %v1158_v5 = vand.u32 4294901760, %v57_v2  ;;  %v55_v7 = vld [vmem:[#allocation5 + $0x60] sm:$0xff]  ;;  %v54_v8 = vld [vmem:[#allocation5 + $0x58] sm:$0xff]  ;;  %s1123_s24 = smov [#allocation7]  }
  0x1c   :  { %864 = vmatprep.mubr.msk.f32.mxu0 %vm1122_vm0, %v1121_v0  ;;  %899 = vmatprep.mubr.msk.f32.mxu1 %vm1122_vm0, %v1121_v0  ;;  %v1160_v6 = vand.u32 4294901760, %v56_v3  ;;  %v53_v9 = vld [vmem:[#allocation5 + $0x50] sm:$0xff]  ;;  %v1162_v10 = vand.u32 4294901760, %v55_v7  ;;  %v1164_v11 = vand.u32 4294901760, %v54_v8  ;;  %v52_v13 = vld [vmem:[#allocation5 + $0x48] sm:$0xff]  ;;  %v51_v14 = vld [vmem:[#allocation5 + $0x40] sm:$0xff] }
  0x1d   :  { %v1166_v12 = vand.u32 4294901760, %v53_v9  ;;  %833 = vmatpush3.msra.mxu0 %v1156_v4  ;;  %v1170_v15 = vsub.f32 %v58_v1, %v1156_v4  ;;  %v1173_v16 = vsub.f32 %v57_v2, %v1158_v5  ;;  %v1175_v17 = vand.u32 4294901760, %v52_v13  ;;  %v50_v19 = vld [vmem:[#allocation5 + $0x38] sm:$0xff]  ;;  %v49_v26 = vld [vmem:[#allocation5 + $0x30] sm:$0xff]  ;;  %v48_v34 = vld [vmem:[#allocation5 + $0x28] sm:$0xff]  ;;  %s719_s25 = sshll.u32 %s1123_s24, 4  ;;  %s720_s25 = int_to_ptr.vmem [resolvable:$true] %s719_s25 }
  0x1e   :  { %v1178_v18 = vsub.f32 %v56_v3, %v1160_v6  ;;  %834 = vmatprep.subr.mxu0 %v1121_v0  ;;  %v1182_v20 = vsub.f32 %v55_v7, %v1162_v10  ;;  %v1185_v21 = vsub.f32 %v54_v8, %v1164_v11  ;;  %v1191_v25 = vand.u32 4294901760, %v51_v14  ;;  %v47_v41 = vld [vmem:[#allocation5 + $0x20] sm:$0xff]  ;;  %v1236_v48 = vld [vmem:[#allocation2] sm:$0xf]  ;;  %v45_v54 = vld [vmem:[#allocation5 + $0x10] sm:$0xff]  ;;  %s1091_s26 = scalar_lea.vmem %s720_s25, 64  ;;  %p1096_p11 = scmp.lt.s32.totalorder %s720_s25, %s720_s25 }
  0x1f   :  { %835 = vmatpush3.msra.mxu0 %v1158_v5  ;;  %v153_v22 = vand.u32 4294901760, %v1170_v15  ;;  %v160_v23 = vand.u32 4294901760, %v1173_v16  ;;  %v1195_v28 = vand.u32 4294901760, %v50_v19  ;;  %v1199_v30 = vsub.f32 %v53_v9, %v1166_v12  ;;  %v46_v50 = vld [vmem:[#allocation5 + $0x18] sm:$0xff]  ;;  %v44_v61 = vld [vmem:[#allocation5 + $0x8] sm:$0xff]  ;;  %v43_v8 = vld [vmem:[#allocation5] sm:$0xff]  ;;  %p1092_p10 = scmp.ne.s32.totalorder %s720_s25, %s1091_s26  ;;  %p1097_p12 = scmp.lt.s32.totalorder %s1091_s26, %s1091_s26 }
  0x20   :  { %v167_v24 = vand.u32 4294901760, %v1178_v18  ;;  %836 = vmatprep.subr.mxu0 %v1121_v0  ;;  %v174_v27 = vand.u32 4294901760, %v1182_v20  ;;  %v181_v29 = vand.u32 4294901760, %v1185_v21  ;;  %v1212_v35 = vsub.f32 %v52_v13, %v1175_v17 }
  0x21   :  { %837 = vmatpush3.msra.mxu0 %v1160_v6  ;;  %v154_v31 = vsub.f32 %v1170_v15, %v153_v22  ;;  %v161_v32 = vsub.f32 %v1173_v16, %v160_v23  ;;  %v1215_v36 = vand.u32 4294901760, %v49_v26  ;;  %v188_v40 = vand.u32 4294901760, %v1199_v30  ;;  %p1098_p13 = por %p1097_p12, %p1096_p11 }
  0x22   :  { %v168_v33 = vsub.f32 %v1178_v18, %v167_v24  ;;  %838 = vmatprep.subr.mxu0 %v1121_v0  ;;  %v175_v39 = vsub.f32 %v1182_v20, %v174_v27  ;;  %v1223_v42 = vand.u32 4294901760, %v48_v34  ;;  %v1226_v43 = vsub.f32 %v51_v14, %v1191_v25 }
  0x23   :  { %839 = vmatpush3.msra.mxu0 %v1162_v10  ;;  %v155_v37 = vand.u32 4294901760, %v154_v31  ;;  %v162_v38 = vand.u32 4294901760, %v161_v32  ;;  %v182_v45 = vsub.f32 %v1185_v21, %v181_v29  ;;  %v195_v46 = vand.u32 4294901760, %v1212_v35  ;;  %p1099_p0 = pnand %p1098_p13, %p1092_p10 }
  0x24   :  { %840 = vmatprep.subr.mxu0 %v1121_v0  ;;  %v169_v44 = vand.u32 4294901760, %v168_v33  ;;  %v1234_v47 = vsub.f32 %v50_v19, %v1195_v28  ;;  %v1240_v49 = vand.u32 4294901760, %v47_v41  ;;  %v176_v51 = vand.u32 4294901760, %v175_v39 }
  0x25   :  { %841 = vmatpush3.msra.mxu0 %v1164_v11  ;;  %868 = vmatpush3.msra.mxu1 %v155_v37  ;;  %v189_v52 = vsub.f32 %v1199_v30, %v188_v40  ;;  %v202_v53 = vand.u32 4294901760, %v1226_v43  ;;  %v1248_v55 = vsub.f32 %v49_v26, %v1215_v36  ;;  %v42_v57 = vmul.f32 %v1236_v48, %v1236_v48 }
  0x26   :  { %842 = vmatprep.subr.mxu0 %v1121_v0  ;;  %869 = vmatprep.subr.mxu1 %v1121_v0  ;;  %v209_v56 = vand.u32 4294901760, %v1234_v47  ;;  %v183_v58 = vand.u32 4294901760, %v182_v45  ;;  %v196_v59 = vsub.f32 %v1212_v35, %v195_v46  ;;  %v1259_v60 = vand.u32 4294901760, %v46_v50 }
  0x27   :  { %843 = vmatpush3.msra.mxu0 %v1166_v12  ;;  %870 = vmatpush3.msra.mxu1 %v162_v38  ;;  %v1262_v62 = vsub.f32 %v48_v34, %v1223_v42  ;;  %v1266_v63 = vand.u32 4294901760, %v45_v54  ;;  %v1268_v1 = vand.u32 4294901760, %v42_v57  ;;  %v190_v2 = vand.u32 4294901760, %v189_v52 }
  0x28   :  { %844 = vmatprep.subr.mxu0 %v1121_v0  ;;  %871 = vmatprep.subr.mxu1 %v1121_v0  ;;  %v203_v3 = vsub.f32 %v1226_v43, %v202_v53  ;;  %v216_v7 = vand.u32 4294901760, %v1248_v55  ;;  %v1276_v9 = vsub.f32 %v47_v41, %v1240_v49  ;;  %v210_v13 = vsub.f32 %v1234_v47, %v209_v56 }
  0x29   :  { %845 = vmatpush3.msra.mxu0 %v1175_v17  ;;  %872 = vmatpush3.msra.mxu1 %v169_v44  ;;  %v1283_v14 = vand.u32 4294901760, %v44_v61  ;;  %v197_v19 = vand.u32 4294901760, %v196_v59  ;;  %v223_v26 = vand.u32 4294901760, %v1262_v62  ;;  %v1288_v31 = vsub.f32 %v42_v57, %v1268_v1 }
  0x2a   :  { %846 = vmatprep.subr.mxu0 %v1121_v0  ;;  %873 = vmatprep.subr.mxu1 %v1121_v0  ;;  %v1291_v32 = vsub.f32 %v46_v50, %v1259_v60  ;;  %v1295_v33 = vand.u32 4294901760, %v43_v8  ;;  %v204_v34 = vand.u32 4294901760, %v203_v3  ;;  %v217_v37 = vsub.f32 %v1248_v55, %v216_v7 }
  0x2b   :  { %847 = vmatpush3.msra.mxu0 %v1191_v25  ;;  %874 = vmatpush3.msra.mxu1 %v176_v51  ;;  %v230_v38 = vand.u32 4294901760, %v1276_v9  ;;  %v1303_v39 = vsub.f32 %v45_v54, %v1266_v63  ;;  %v211_v41 = vand.u32 4294901760, %v210_v13  ;;  %v224_v44 = vsub.f32 %v1262_v62, %v223_v26 }
  0x2c   :  { %848 = vmatprep.subr.mxu0 %v1121_v0  ;;  %875 = vmatprep.subr.mxu1 %v1121_v0  ;;  %v142_v45 = vand.u32 4294901760, %v1288_v31  ;;  %v237_v50 = vand.u32 4294901760, %v1291_v32  ;;  %v1314_v51 = vsub.f32 %v44_v61, %v1283_v14  ;;  %v218_v52 = vand.u32 4294901760, %v217_v37 }
  0x2d   :  { %849 = vmatpush3.msra.mxu0 %v1195_v28  ;;  %876 = vmatpush3.msra.mxu1 %v183_v58  ;;  %v231_v54 = vsub.f32 %v1276_v9, %v230_v38  ;;  %v244_v57 = vand.u32 4294901760, %v1303_v39  ;;  %v1324_v58 = vsub.f32 %v43_v8, %v1295_v33  ;;  %v225_v59 = vand.u32 4294901760, %v224_v44 }
  0x2e   :  { %850 = vmatprep.subr.mxu0 %v1121_v0  ;;  %877 = vmatprep.subr.mxu1 %v1121_v0  ;;  %v143_v61 = vsub.f32 %v1288_v31, %v142_v45  ;;  %v251_v3 = vand.u32 4294901760, %v1314_v51 }
  0x2f   :  { %851 = vmatpush3.msra.mxu0 %v1215_v36  ;;  %878 = vmatpush3.msra.mxu1 %v190_v2  ;;  %v238_v2 = vsub.f32 %v1291_v32, %v237_v50  ;;  %v232_v8 = vand.u32 4294901760, %v231_v54  ;;  %v245_v13 = vsub.f32 %v1303_v39, %v244_v57 }
  0x30   :  { %852 = vmatprep.subr.mxu0 %v1121_v0  ;;  %879 = vmatprep.subr.mxu1 %v1121_v0 }
  0x31   :  { %853 = vmatpush3.msra.mxu0 %v1223_v42  ;;  %880 = vmatpush3.msra.mxu1 %v197_v19  ;;  %v258_v19 = vand.u32 4294901760, %v1324_v58  ;;  %v239_v37 = vand.u32 4294901760, %v238_v2  ;;  %v246_v44 = vand.u32 4294901760, %v245_v13 }
  0x32   :  { %854 = vmatprep.subr.mxu0 %v1121_v0  ;;  %881 = vmatprep.subr.mxu1 %v1121_v0 }
  0x33   :  { %855 = vmatpush3.msra.mxu0 %v1240_v49  ;;  %882 = vmatpush3.msra.mxu1 %v204_v34  ;;  %v144_v34 = vand.u32 4294901760, %v143_v61 }
  0x34   :  { %856 = vmatprep.subr.mxu0 %v1121_v0  ;;  %883 = vmatprep.subr.mxu1 %v1121_v0 }
  0x35   :  { %857 = vmatpush3.msra.mxu0 %v1259_v60  ;;  %884 = vmatpush3.msra.mxu1 %v211_v41  ;;  %v252_v41 = vsub.f32 %v1314_v51, %v251_v3 }
  0x36   :  { %858 = vmatprep.subr.mxu0 %v1121_v0  ;;  %885 = vmatprep.subr.mxu1 %v1121_v0 }
  0x37   :  { %859 = vmatpush3.msra.mxu0 %v1266_v63  ;;  %886 = vmatpush3.msra.mxu1 %v218_v52  ;;  %v259_v52 = vsub.f32 %v1324_v58, %v258_v19  ;;  %v253_v54 = vand.u32 4294901760, %v252_v41 }
  0x38   :  { %860 = vmatprep.subr.mxu0 %v1121_v0  ;;  %887 = vmatprep.subr.mxu1 %v1121_v0 }
  0x39   :  { %861 = vmatpush3.msra.mxu0 %v1283_v14  ;;  %888 = vmatpush3.msra.mxu1 %v225_v59  ;;  %v260_v59 = vand.u32 4294901760, %v259_v52 }
  0x3a   :  { %862 = vmatprep.subr.mxu0 %v1121_v0  ;;  %889 = vmatprep.subr.mxu1 %v1121_v0 }
  0x3b   :  { %863 = vmatpush3.msra.mxu0 %v1295_v33  ;;  %890 = vmatpush3.msra.mxu1 %v232_v8 }
  0x3c   :  { %891 = vmatprep.subr.mxu1 %v1121_v0  ;;  %902 = vmatprep.subr.mxu0 %v1121_v0 }
  0x3d   :  { %865 = vmatmul.mubr.f32.vlgmr.msra.gmra.mxu0 %v144_v34  ;;  %892 = vmatpush3.msra.mxu1 %v239_v37 }
  0x3e   :  { %903 = vmatpush3.msra.mxu0 %v1170_v15  ;;  %893 = vmatprep.subr.mxu1 %v1121_v0 }
  0x3f   :  { %904 = vmatprep.subr.mxu0 %v1121_v0  ;;  %894 = vmatpush3.msra.mxu1 %v246_v44 }
  0x40   :  { %905 = vmatpush3.msra.mxu0 %v1173_v16  ;;  %895 = vmatprep.subr.mxu1 %v1121_v0 }
  0x41   :  { %906 = vmatprep.subr.mxu0 %v1121_v0  ;;  %896 = vmatpush3.msra.mxu1 %v253_v54 }
  0x42   :  { %907 = vmatpush3.msra.mxu0 %v1178_v18  ;;  %897 = vmatprep.subr.mxu1 %v1121_v0 }
  0x43   :  { %908 = vmatprep.subr.mxu0 %v1121_v0  ;;  %898 = vmatpush3.msra.mxu1 %v260_v59 }
  0x44   :  { %909 = vmatpush3.msra.mxu0 %v1182_v20  ;;  %900 = vmatmul.mubr.f32.vlgmr.msra.gmra.mxu1 %v1268_v1 }
  0x45   :  { %910 = vmatprep.subr.mxu0 %v1121_v0  ;;  %937 = vmatprep.subr.mxu1 %v1121_v0 }
  0x46   :  { %911 = vmatpush3.msra.mxu0 %v1185_v21  ;;  %938 = vmatpush3.msra.mxu1 %v1156_v4 }
  0x47   :  { %912 = vmatprep.subr.mxu0 %v1121_v0  ;;  %939 = vmatprep.subr.mxu1 %v1121_v0 }
  0x48   :  { %913 = vmatpush3.msra.mxu0 %v1199_v30  ;;  %940 = vmatpush3.msra.mxu1 %v1158_v5  ;;  %v729_v30 = vld [vmem:[%s1525_s1] ss:$0 sm:$0xff] }
  0x49   :  { %914 = vmatprep.subr.mxu0 %v1121_v0  ;;  %941 = vmatprep.subr.mxu1 %v1121_v0 }
  0x4a   :  { %915 = vmatpush3.msra.mxu0 %v1212_v35  ;;  %942 = vmatpush3.msra.mxu1 %v1160_v6 }
  0x4b   :  { %916 = vmatprep.subr.mxu0 %v1121_v0  ;;  %943 = vmatprep.subr.mxu1 %v1121_v0 }
  0x4c   :  { %917 = vmatpush3.msra.mxu0 %v1226_v43  ;;  %944 = vmatpush3.msra.mxu1 %v1162_v10 }
  0x4d   :  { %918 = vmatprep.subr.mxu0 %v1121_v0  ;;  %945 = vmatprep.subr.mxu1 %v1121_v0 }
  0x4e   :  { %919 = vmatpush3.msra.mxu0 %v1234_v47  ;;  %946 = vmatpush3.msra.mxu1 %v1164_v11 }
  0x4f   :  { %920 = vmatprep.subr.mxu0 %v1121_v0  ;;  %947 = vmatprep.subr.mxu1 %v1121_v0 }
  0x50   :  { %921 = vmatpush3.msra.mxu0 %v1248_v55  ;;  %948 = vmatpush3.msra.mxu1 %v1166_v12 }
  0x51   :  { %922 = vmatprep.subr.mxu0 %v1121_v0  ;;  %949 = vmatprep.subr.mxu1 %v1121_v0 }
  0x52   :  { %923 = vmatpush3.msra.mxu0 %v1262_v62  ;;  %950 = vmatpush3.msra.mxu1 %v1175_v17 }
  0x53   :  { %924 = vmatprep.subr.mxu0 %v1121_v0  ;;  %951 = vmatprep.subr.mxu1 %v1121_v0 }
  0x54   :  { %925 = vmatpush3.msra.mxu0 %v1276_v9  ;;  %952 = vmatpush3.msra.mxu1 %v1191_v25 }
  0x55   :  { %926 = vmatprep.subr.mxu0 %v1121_v0  ;;  %953 = vmatprep.subr.mxu1 %v1121_v0 }
  0x56   :  { %927 = vmatpush3.msra.mxu0 %v1291_v32  ;;  %954 = vmatpush3.msra.mxu1 %v1195_v28 }
  0x57   :  { %928 = vmatprep.subr.mxu0 %v1121_v0  ;;  %955 = vmatprep.subr.mxu1 %v1121_v0 }
  0x58   :  { %929 = vmatpush3.msra.mxu0 %v1303_v39  ;;  %956 = vmatpush3.msra.mxu1 %v1215_v36 }
  0x59   :  { %930 = vmatprep.subr.mxu0 %v1121_v0  ;;  %957 = vmatprep.subr.mxu1 %v1121_v0 }
  0x5a   :  { %931 = vmatpush3.msra.mxu0 %v1314_v51  ;;  %958 = vmatpush3.msra.mxu1 %v1223_v42 }
  0x5b   :  { %932 = vmatprep.subr.mxu0 %v1121_v0  ;;  %959 = vmatprep.subr.mxu1 %v1121_v0 }
  0x5c   :  { %933 = vmatpush3.msra.mxu0 %v1324_v58  ;;  %934 = vmatprep.mubr.msk.f32.mxu0 %vm1122_vm0, %v1121_v0 }
  0x5d   :  { %960 = vmatpush3.msra.mxu1 %v1240_v49  ;;  %935 = vmatmul.mubr.f32.vlgmr.msra.gmra.mxu0 %v1288_v31 }
  0x5e   :  { %961 = vmatprep.subr.mxu1 %v1121_v0  ;;  %972 = vmatprep.subr.mxu0 %v1121_v0 }
  0x5f   :  { %962 = vmatpush3.msra.mxu1 %v1259_v60  ;;  %973 = vmatpush3.msra.mxu0 %v153_v22 }
  0x60   :  { %963 = vmatprep.subr.mxu1 %v1121_v0  ;;  %974 = vmatprep.subr.mxu0 %v1121_v0 }
  0x61   :  { %964 = vmatpush3.msra.mxu1 %v1266_v63  ;;  %975 = vmatpush3.msra.mxu0 %v160_v23 }
  0x62   :  { %965 = vmatprep.subr.mxu1 %v1121_v0  ;;  %976 = vmatprep.subr.mxu0 %v1121_v0 }
  0x63   :  { %966 = vmatpush3.msra.mxu1 %v1283_v14  ;;  %977 = vmatpush3.msra.mxu0 %v167_v24 }
  0x64   :  { %967 = vmatprep.subr.mxu1 %v1121_v0  ;;  %978 = vmatprep.subr.mxu0 %v1121_v0 }
  0x65   :  { %968 = vmatpush3.msra.mxu1 %v1295_v33  ;;  %969 = vmatprep.mubr.msk.f32.mxu1 %vm1122_vm0, %v1121_v0 }
  0x66   :  { %979 = vmatpush3.msra.mxu0 %v174_v27  ;;  %970 = vmatmul.mubr.f32.vlgmr.msra.gmra.mxu1 %v142_v45 }
  0x67   :  { %980 = vmatprep.subr.mxu0 %v1121_v0  ;;  %1007 = vmatprep.subr.mxu1 %v1121_v0 }
  0x68   :  { %981 = vmatpush3.msra.mxu0 %v181_v29  ;;  %1008 = vmatpush3.msra.mxu1 %v1156_v4 }
  0x69   :  { %982 = vmatprep.subr.mxu0 %v1121_v0  ;;  %1009 = vmatprep.subr.mxu1 %v1121_v0 }
  0x6a   :  { %983 = vmatpush3.msra.mxu0 %v188_v40  ;;  %1010 = vmatpush3.msra.mxu1 %v1158_v5 }
  0x6b   :  { %984 = vmatprep.subr.mxu0 %v1121_v0  ;;  %1011 = vmatprep.subr.mxu1 %v1121_v0 }
  0x6c   :  { %985 = vmatpush3.msra.mxu0 %v195_v46  ;;  %1012 = vmatpush3.msra.mxu1 %v1160_v6 }
  0x6d   :  { %986 = vmatprep.subr.mxu0 %v1121_v0  ;;  %1013 = vmatprep.subr.mxu1 %v1121_v0 }
  0x6e   :  { %987 = vmatpush3.msra.mxu0 %v202_v53  ;;  %1014 = vmatpush3.msra.mxu1 %v1162_v10 }
  0x6f   :  { %988 = vmatprep.subr.mxu0 %v1121_v0  ;;  %1015 = vmatprep.subr.mxu1 %v1121_v0 }
  0x70   :  { %989 = vmatpush3.msra.mxu0 %v209_v56  ;;  %1016 = vmatpush3.msra.mxu1 %v1164_v11 }
  0x71   :  { %990 = vmatprep.subr.mxu0 %v1121_v0  ;;  %1017 = vmatprep.subr.mxu1 %v1121_v0 }
  0x72   :  { %991 = vmatpush3.msra.mxu0 %v216_v7  ;;  %1018 = vmatpush3.msra.mxu1 %v1166_v12 }
  0x73   :  { %992 = vmatprep.subr.mxu0 %v1121_v0  ;;  %1019 = vmatprep.subr.mxu1 %v1121_v0 }
  0x74   :  { %993 = vmatpush3.msra.mxu0 %v223_v26  ;;  %1020 = vmatpush3.msra.mxu1 %v1175_v17 }
  0x75   :  { %994 = vmatprep.subr.mxu0 %v1121_v0  ;;  %1021 = vmatprep.subr.mxu1 %v1121_v0 }
  0x76   :  { %995 = vmatpush3.msra.mxu0 %v230_v38  ;;  %1022 = vmatpush3.msra.mxu1 %v1191_v25 }
  0x77   :  { %996 = vmatprep.subr.mxu0 %v1121_v0  ;;  %1023 = vmatprep.subr.mxu1 %v1121_v0 }
  0x78   :  { %997 = vmatpush3.msra.mxu0 %v237_v50  ;;  %1024 = vmatpush3.msra.mxu1 %v1195_v28 }
  0x79   :  { %998 = vmatprep.subr.mxu0 %v1121_v0  ;;  %1025 = vmatprep.subr.mxu1 %v1121_v0 }
  0x7a   :  { %999 = vmatpush3.msra.mxu0 %v244_v57  ;;  %1026 = vmatpush3.msra.mxu1 %v1215_v36 }
  0x7b   :  { %1000 = vmatprep.subr.mxu0 %v1121_v0  ;;  %1027 = vmatprep.subr.mxu1 %v1121_v0 }
  0x7c   :  { %1001 = vmatpush3.msra.mxu0 %v251_v3  ;;  %1028 = vmatpush3.msra.mxu1 %v1223_v42 }
  0x7d   :  { %1002 = vmatprep.subr.mxu0 %v1121_v0  ;;  %1029 = vmatprep.subr.mxu1 %v1121_v0 }
  0x7e   :  { %1003 = vmatpush3.msra.mxu0 %v258_v19  ;;  %1004 = vmatprep.mubr.msk.f32.mxu0 %vm1122_vm0, %v1121_v0 }
  0x7f   :  { %1030 = vmatpush3.msra.mxu1 %v1240_v49  ;;  %1005 = vmatmul.mubr.f32.vlgmr.msra.gmra.mxu0 %v1268_v1 }
  0x80   :  { %1031 = vmatprep.subr.mxu1 %v1121_v0  ;;  %1039 = vmatprep.mubr.msk.f32.mxu1 %vm1122_vm0, %v1121_v0 }
  0x81   :  { %1032 = vmatpush3.msra.mxu1 %v1259_v60 }
  0x82   :  { %1033 = vmatprep.subr.mxu1 %v1121_v0 }
  0x83   :  { %1034 = vmatpush3.msra.mxu1 %v1266_v63 }
  0x84   :  { %1035 = vmatprep.subr.mxu1 %v1121_v0 }
  0x85   :  { %1036 = vmatpush3.msra.mxu1 %v1283_v14 }
  0x86   :  { %1037 = vmatprep.subr.mxu1 %v1121_v0 }
  0x87   :  { %1038 = vmatpush3.msra.mxu1 %v1295_v33 }
  0x88   :  { %1040 = vmatmul.mubr.f32.vlgmr.msra.gmra.mxu1 %v1268_v1 }
  0xfd   :  { %v146_v4 = vpop.f32.mrf.mxu0 }
  0xff   :  { %v866_v5 = vpop.f32.mrf.mxu0 }
 0x104   :  { %v297_v6 = vpop.f32.mrf.mxu1 }
 0x105   :  { %v298_v18 = vadd.f32 %v297_v6, %v146_v4 }
 0x106   :  { %v901_v10 = vpop.f32.mrf.mxu1 }
 0x11d   :  { %v401_v11 = vpop.f32.mrf.mxu0 }
 0x11e   :  { %v402_v21 = vadd.f32 %v401_v11, %v298_v18 }
 0x11f   :  { %v936_v12 = vpop.f32.mrf.mxu0 }
 0x126   :  { %v490_v15 = vpop.f32.mrf.mxu1 }
 0x127   :  { %v491_v22 = vadd.f32 %v490_v15, %v402_v21 }
 0x128   :  { %v971_v16 = vpop.f32.mrf.mxu1 }
 0x13f   :  { %v609_v17 = vpop.f32.mrf.mxu0 }
 0x140   :  { %v610_v23 = vadd.f32 %v609_v17, %v491_v22 }
 0x141   :  { %v1006_v20 = vpop.f32.mrf.mxu0 }
 0x148   :  { %v696_v24 = vpop.f32.mrf.mxu1 }
 0x149   :  { %v697_v0 = vadd.f32 %v696_v24, %v610_v23 }
 0x14a   :  { %v1041_v25 = vpop.f32.mrf.mxu1 }
 0x14b   :  { %v700_v27 = vmul.f32 0.03125, %v697_v0 }
 0x14d   :  { %v701_v28 = vadd.f32 1e-06, %v700_v27 }
 0x14f   :  { %1049 = vrsqrt.f32 %v701_v28 }
 0x15c   :  { %v1050_v29 = vpop.eup %1049 }
 0x15d   :  { %v703_v35 = vmul.f32 %v1050_v29, %v1236_v48 }
 0x15f   :  { %v711_v36 = vmul.f32 %v729_v30, %v703_v35 }
 0x161   :  { %712 = vst [vmem:[#allocation7] sm:$0xf] %v711_v36 }
 0x162   :  { %1102 = shalt.err (!%p1099_p0)
}
 0x163   :  { %722 = dma.vmem_to_hbm [thread:$0]  %s720_s25, 64, %s1527_s3, [#allocation4]  }
 0x164   :  { %1115 = dma.done.wait [#allocation4], 64  }
 0x165   :  { %1116 = vsyncadd [#allocation4], 4294967232 }
 0x166   :  { %726 = vsyncpa [#allocation3], 1 }
 0x167   :  { %727 = vsyncpa [#allocation6], 1 }
 0x168   :  { %728 = vsyncpa [#allocation4], 1 }

</bundles_post_ra>
